<compile_context>
chip_gen: v7x
topology: tpu7x:2x2x1
jax: 0.10.0
libtpu: 0.0.40
codegen_flags: <defaults>
</compile_context>

<pallas_src>
import functools

import jax
import jax.numpy as jnp
from jax.experimental import pallas as pl
from jax.experimental.pallas import tpu as pltpu


def _policy_kernel(x_ref, w1_ref, b1_ref, w2_ref, b2_ref, w3_ref, b3_ref, out_ref):
    # Matmul operands in the weights' (bf16) dtype; matmuls accumulate in f32.
    # The inter-layer epilogue dtype is carried by the b1/b2 dtype (bf16 on
    # v6e/v7x, f32 on v5e); the final bias-add + tanh epilogue stays in f32.
    x = x_ref[...].astype(w1_ref.dtype)
    ep = b1_ref.dtype

    # Layer 1: (TB, F) @ (F, H1) + (1, H1) -> ReLU
    h1 = jnp.dot(x, w1_ref[...], preferred_element_type=jnp.float32).astype(ep)
    h1 = jnp.maximum(h1 + b1_ref[...], 0).astype(w2_ref.dtype)

    # Layer 2: (TB, H1) @ (H1, H2) + (1, H2) -> ReLU
    h2 = jnp.dot(h1, w2_ref[...], preferred_element_type=jnp.float32).astype(ep)
    h2 = jnp.maximum(h2 + b2_ref[...], 0).astype(w3_ref.dtype)

    # Output layer (means half only, zero-padded to a lane-dense width):
    # (TB, H2) @ (H2, A_pad) + (1, A_pad) -> tanh
    y = jnp.dot(h2, w3_ref[...], preferred_element_type=jnp.float32) + b3_ref[...]
    out_ref[...] = jnp.tanh(y).astype(out_ref.dtype)


def _default_epilogue_dtype():
    """bf16 inter-layer epilogue where the VPU supports it (v6e/v7x), else f32."""
    try:
        kind = jax.devices()[0].device_kind.lower()
    except Exception:  # pragma: no cover
        return jnp.float32
    return jnp.bfloat16 if ("v6" in kind or "v7" in kind) else jnp.float32


def state_dependent_policy_forward(states, params, action_dim, *,
                                   block_batch=2048,
                                   compute_dtype=jnp.bfloat16,
                                   epilogue_dtype=None,
                                   out_dtype=jnp.bfloat16):
    """states: (B, feature_dim) float32.  Returns tanh(means): (B, action_dim)."""
    if epilogue_dtype is None:
        epilogue_dtype = _default_epilogue_dtype()

    w1, b1, w2, b2, w3, b3 = params
    B, F = states.shape
    H1 = w1.shape[1]
    H2 = w2.shape[1]

    # ---- host-side prep ----------------------------------------------------
    # Keep only the "means" half of the last layer; zero-pad its columns to a
    # multiple of 128 so the kernel computes/stores a lane-dense tile.
    A_pad = max(128, pl.cdiv(action_dim, 128) * 128)
    w3m = jnp.pad(w3[:, :action_dim], ((0, 0), (0, A_pad - action_dim)))
    b3m = jnp.pad(b3[:, :action_dim], ((0, 0), (0, A_pad - action_dim)))

    # bf16 weights (MXU-native, halves weight HBM bytes); b1/b2 in the epilogue
    # dtype; b3 stays f32 (final epilogue is f32).
    w1c = w1.astype(compute_dtype)
    w2c = w2.astype(compute_dtype)
    w3c = w3m.astype(compute_dtype)
    b1e = b1.astype(epilogue_dtype)
    b2e = b2.astype(epilogue_dtype)
    b3f = b3m.astype(jnp.float32)

    # ---- batch tiling --------------------------------------------------------
    # Small batches (<= 8 rows): a single full-batch block (full-dim blocks are
    # exempt from the (8,128) rule).  Otherwise: at least 2 tiles (so v7x's two
    # TensorCores both get grid work), at most block_batch rows per tile, and
    # tile height rounded up to a multiple of 8.
    if B <= 8:
        TB = B
    else:
        n_tiles = max(2, pl.cdiv(B, block_batch))
        TB = ((pl.cdiv(B, n_tiles) + 7) // 8) * 8
    grid = (pl.cdiv(B, TB),)

    const = lambda i: (0, 0)  # weights/biases: same block every step -> resident

    itemsize_out = jnp.dtype(out_dtype).itemsize
    cost = pl.CostEstimate(
        flops=2 * B * (F * H1 + H1 * H2 + H2 * A_pad),
        transcendentals=B * A_pad,
        bytes_accessed=(B * F * 4
                        + 2 * (F * H1 + H1 * H2 + H2 * A_pad)
                        + B * A_pad * itemsize_out),
    )

    out_padded = pl.pallas_call(
        _policy_kernel,
        out_shape=jax.ShapeDtypeStruct((B, A_pad), out_dtype),
        grid=grid,
        in_specs=[
            pl.BlockSpec((TB, F), lambda i: (i, 0)),   # states tile (pipelined)
            pl.BlockSpec((F, H1), const),              # W1 (resident)
            pl.BlockSpec((1, H1), const),              # b1
            pl.BlockSpec((H1, H2), const),             # W2
            pl.BlockSpec((1, H2), const),              # b2
            pl.BlockSpec((H2, A_pad), const),          # W3 (means half, padded)
            pl.BlockSpec((1, A_pad), const),           # b3 (means half, padded)
        ],
        out_specs=pl.BlockSpec((TB, A_pad), lambda i: (i, 0)),
        compiler_params=pltpu.CompilerParams(
            dimension_semantics=("parallel",),
            vmem_limit_bytes=32 * 1024 * 1024,
        ),
        cost_estimate=cost,
    )(states, w1c, b1e, w2c, b2e, w3c, b3f)

    # Drop the lane padding.  Under jit this slice fuses with the kernel output.
    return out_padded[:, :action_dim]


def init_params(key, feature_dim, net_arch, action_dim):
    """Deterministic synthetic init (shapes match MLP(feature_dim, net_arch, 2*A))."""
    dims = [feature_dim, *net_arch, 2 * action_dim]
    params = []
    for i in range(len(dims) - 1):
        key, kw, kb = jax.random.split(key, 3)
        fan_in = dims[i]
        scale = 1.0 / jnp.sqrt(fan_in)
        # Stored as (in, out); PyTorch nn.Linear stores (out, in).
        w = jax.random.uniform(kw, (dims[i], dims[i + 1]), jnp.float32, -scale, scale)
        b = jax.random.uniform(kb, (1, dims[i + 1]), jnp.float32, -scale, scale)
        params += [w, b]
    return tuple(params)


def reference_forward_f32(states, params, action_dim):
    """Pure-f32 JAX reference of the PyTorch forward pass."""
    w1, b1, w2, b2, w3, b3 = params
    h = jnp.maximum(states @ w1 + b1, 0.0)
    h = jnp.maximum(h @ w2 + b2, 0.0)
    y = h @ w3 + b3
    return jnp.tanh(y[:, :action_dim])


def reference_forward_matched(states, params, action_dim, *,
                              compute_dtype=jnp.bfloat16,
                              epilogue_dtype=jnp.float32,
                              out_dtype=jnp.bfloat16):
    """Reference using the same precision recipe as the kernel."""
    w1, b1, w2, b2, w3, b3 = params
    cd = compute_dtype
    ep = epilogue_dtype
    h = jnp.dot(states.astype(cd), w1.astype(cd),
                preferred_element_type=jnp.float32).astype(ep)
    h = jnp.maximum(h + b1.astype(ep), 0).astype(cd)
    h = jnp.dot(h, w2.astype(cd), preferred_element_type=jnp.float32).astype(ep)
    h = jnp.maximum(h + b2.astype(ep), 0).astype(cd)
    y = jnp.dot(h, w3[:, :action_dim].astype(cd),
                preferred_element_type=jnp.float32) + b3[:, :action_dim]
    return jnp.tanh(y).astype(out_dtype)


if __name__ == "__main__":
    feature_dim = 32
    net_arch = (256, 256)
    action_dim = 4          # e.g. Box action space with shape (4,)
    batch = 8               # small demo shapes; large batches tile at <=2048 rows

    key = jax.random.PRNGKey(0)
    key, kx = jax.random.split(key)
    states = jax.random.normal(kx, (batch, feature_dim), jnp.float32)
    params = init_params(key, feature_dim, net_arch, action_dim)

    epilogue_dtype = _default_epilogue_dtype()

    fwd = jax.jit(functools.partial(state_dependent_policy_forward,
                                    action_dim=action_dim,
                                    epilogue_dtype=epilogue_dtype))
    out = fwd(states, params)
    out = jax.block_until_ready(out)

    assert out.shape == (batch, action_dim)
    out_f32 = out.astype(jnp.float32)

    # Same-precision reference (bf16 matmul operands, f32 accumulation, same
    # epilogue/output dtypes as the kernel) — tight tolerance (1 bf16 ulp slack).
    ref_matched = reference_forward_matched(
        states, params, action_dim,
        epilogue_dtype=epilogue_dtype).astype(jnp.float32)
    assert jnp.allclose(out_f32, ref_matched, atol=1e-2, rtol=1e-2), \
        "mismatch vs matched-precision reference"

    # Full-f32 PyTorch-semantics reference — loose tolerance covers bf16
    # weights / epilogue / output.
    ref_f32 = reference_forward_f32(states, params, action_dim)
    assert jnp.allclose(out_f32, ref_f32, atol=5e-2, rtol=5e-2), \
        "mismatch vs f32 reference"

    # TODO(synk): sample()/distribution()/evaluate_action() (reparameterized
    # TanhNormal sampling / log-prob) are not part of forward() and are left to
    # host JAX.

    print("KERNEL_OK")
</pallas_src>

<mosaic_0001>
module attributes {stable_mosaic.version = 11 : i64} {
  func.func @_policy_kernel(%arg0: i32, %arg1: memref<8x32xf32, #tpu.memory_space<vmem>>, %arg2: memref<32x256xbf16, #tpu.memory_space<vmem>>, %arg3: memref<1x256xf32, #tpu.memory_space<vmem>>, %arg4: memref<256x256xbf16, #tpu.memory_space<vmem>>, %arg5: memref<1x256xf32, #tpu.memory_space<vmem>>, %arg6: memref<256x128xbf16, #tpu.memory_space<vmem>>, %arg7: memref<1x128xf32, #tpu.memory_space<vmem>>, %arg8: memref<8x128xbf16, #tpu.memory_space<vmem>>) attributes {dimension_semantics = [#tpu.dimension_semantics<parallel>], iteration_bounds = array<i64: 1>, scalar_prefetch = 0 : i64, scratch_operands = 0 : i64, tpu.core_type = #tpu.core_type<tc>, window_params = [{transform_indices = @transform_0, window_bounds = array<i64: 8, 32>}, {pipeline_mode = #tpu.pipeline_mode<synchronous>, transform_indices = @transform_1, window_bounds = array<i64: 32, 256>}, {pipeline_mode = #tpu.pipeline_mode<synchronous>, transform_indices = @transform_2, window_bounds = array<i64: 1, 256>}, {pipeline_mode = #tpu.pipeline_mode<synchronous>, transform_indices = @transform_3, window_bounds = array<i64: 256, 256>}, {pipeline_mode = #tpu.pipeline_mode<synchronous>, transform_indices = @transform_4, window_bounds = array<i64: 1, 256>}, {pipeline_mode = #tpu.pipeline_mode<synchronous>, transform_indices = @transform_5, window_bounds = array<i64: 256, 128>}, {pipeline_mode = #tpu.pipeline_mode<synchronous>, transform_indices = @transform_6, window_bounds = array<i64: 1, 128>}, {transform_indices = @transform_7, window_bounds = array<i64: 8, 128>}]} {
    %c0 = arith.constant 0 : index
    %c0_0 = arith.constant 0 : index
    %0 = vector.load %arg1[%c0, %c0_0] : memref<8x32xf32, #tpu.memory_space<vmem>>, vector<8x32xf32>
    %1 = arith.truncf %0 : vector<8x32xf32> to vector<8x32xbf16>
    %c0_1 = arith.constant 0 : index
    %c0_2 = arith.constant 0 : index
    %2 = vector.load %arg2[%c0_1, %c0_2] : memref<32x256xbf16, #tpu.memory_space<vmem>>, vector<32x256xbf16>
    %cst = arith.constant dense<0.000000e+00> : vector<8x256xf32>
    %3 = tpu.matmul %1, %2, %cst {dimension_numbers = #tpu.dot_dimension_numbers<[1], [0], [0], [1], [0, 0, 1, 1], [], []>} : vector<8x32xbf16>, vector<32x256xbf16>, vector<8x256xf32> -> vector<8x256xf32>
    %c0_3 = arith.constant 0 : index
    %c0_4 = arith.constant 0 : index
    %4 = vector.load %arg3[%c0_3, %c0_4] : memref<1x256xf32, #tpu.memory_space<vmem>>, vector<1x256xf32>
    %5 = vector.broadcast %4 : vector<1x256xf32> to vector<8x256xf32>
    %6 = arith.addf %3, %5 : vector<8x256xf32>
    %cst_5 = arith.constant 0.000000e+00 : f32
    %7 = vector.broadcast %cst_5 : f32 to vector<8x256xf32>
    %8 = arith.maximumf %6, %7 : vector<8x256xf32>
    %9 = arith.truncf %8 : vector<8x256xf32> to vector<8x256xbf16>
    %c0_6 = arith.constant 0 : index
    %c0_7 = arith.constant 0 : index
    %10 = vector.load %arg4[%c0_6, %c0_7] : memref<256x256xbf16, #tpu.memory_space<vmem>>, vector<256x256xbf16>
    %cst_8 = arith.constant dense<0.000000e+00> : vector<8x256xf32>
    %11 = tpu.matmul %9, %10, %cst_8 {dimension_numbers = #tpu.dot_dimension_numbers<[1], [0], [0], [1], [0, 0, 1, 1], [], []>} : vector<8x256xbf16>, vector<256x256xbf16>, vector<8x256xf32> -> vector<8x256xf32>
    %c0_9 = arith.constant 0 : index
    %c0_10 = arith.constant 0 : index
    %12 = vector.load %arg5[%c0_9, %c0_10] : memref<1x256xf32, #tpu.memory_space<vmem>>, vector<1x256xf32>
    %13 = vector.broadcast %12 : vector<1x256xf32> to vector<8x256xf32>
    %14 = arith.addf %11, %13 : vector<8x256xf32>
    %cst_11 = arith.constant 0.000000e+00 : f32
    %15 = vector.broadcast %cst_11 : f32 to vector<8x256xf32>
    %16 = arith.maximumf %14, %15 : vector<8x256xf32>
    %17 = arith.truncf %16 : vector<8x256xf32> to vector<8x256xbf16>
    %c0_12 = arith.constant 0 : index
    %c0_13 = arith.constant 0 : index
    %18 = vector.load %arg6[%c0_12, %c0_13] : memref<256x128xbf16, #tpu.memory_space<vmem>>, vector<256x128xbf16>
    %cst_14 = arith.constant dense<0.000000e+00> : vector<8x128xf32>
    %19 = tpu.matmul %17, %18, %cst_14 {dimension_numbers = #tpu.dot_dimension_numbers<[1], [0], [0], [1], [0, 0, 1, 1], [], []>} : vector<8x256xbf16>, vector<256x128xbf16>, vector<8x128xf32> -> vector<8x128xf32>
    %c0_15 = arith.constant 0 : index
    %c0_16 = arith.constant 0 : index
    %20 = vector.load %arg7[%c0_15, %c0_16] : memref<1x128xf32, #tpu.memory_space<vmem>>, vector<1x128xf32>
    %21 = vector.broadcast %20 : vector<1x128xf32> to vector<8x128xf32>
    %22 = arith.addf %19, %21 : vector<8x128xf32>
    %23 = math.tanh %22 : vector<8x128xf32>
    %24 = arith.truncf %23 : vector<8x128xf32> to vector<8x128xbf16>
    %c0_17 = arith.constant 0 : index
    %c0_18 = arith.constant 0 : index
    %25 = vector.load %arg8[%c0_17, %c0_18] : memref<8x128xbf16, #tpu.memory_space<vmem>>, vector<8x128xbf16>
    tpu.vector_store %arg8[%c0_17, %c0_18], %24 {strides = array<i32>} : memref<8x128xbf16, #tpu.memory_space<vmem>>, vector<8x128xbf16>,
    return
  }
  func.func @transform_0(%arg0: i32) -> (i32, i32) {
    %c0_i32 = arith.constant 0 : i32
    %c0_i32_0 = arith.constant 0 : i32
    return %arg0, %c0_i32 : i32, i32
  }
  func.func @transform_1(%arg0: i32) -> (i32, i32) {
    %c0_i32 = arith.constant 0 : i32
    %c0_i32_0 = arith.constant 0 : i32
    %c0_i32_1 = arith.constant 0 : i32
    return %c0_i32, %c0_i32_0 : i32, i32
  }
  func.func @transform_2(%arg0: i32) -> (i32, i32) {
    %c0_i32 = arith.constant 0 : i32
    %c0_i32_0 = arith.constant 0 : i32
    %c0_i32_1 = arith.constant 0 : i32
    return %c0_i32, %c0_i32_0 : i32, i32
  }
  func.func @transform_3(%arg0: i32) -> (i32, i32) {
    %c0_i32 = arith.constant 0 : i32
    %c0_i32_0 = arith.constant 0 : i32
    %c0_i32_1 = arith.constant 0 : i32
    return %c0_i32, %c0_i32_0 : i32, i32
  }
  func.func @transform_4(%arg0: i32) -> (i32, i32) {
    %c0_i32 = arith.constant 0 : i32
    %c0_i32_0 = arith.constant 0 : i32
    %c0_i32_1 = arith.constant 0 : i32
    return %c0_i32, %c0_i32_0 : i32, i32
  }
  func.func @transform_5(%arg0: i32) -> (i32, i32) {
    %c0_i32 = arith.constant 0 : i32
    %c0_i32_0 = arith.constant 0 : i32
    %c0_i32_1 = arith.constant 0 : i32
    return %c0_i32, %c0_i32_0 : i32, i32
  }
  func.func @transform_6(%arg0: i32) -> (i32, i32) {
    %c0_i32 = arith.constant 0 : i32
    %c0_i32_0 = arith.constant 0 : i32
    %c0_i32_1 = arith.constant 0 : i32
    return %c0_i32, %c0_i32_0 : i32, i32
  }
  func.func @transform_7(%arg0: i32) -> (i32, i32) {
    %c0_i32 = arith.constant 0 : i32
    %c0_i32_0 = arith.constant 0 : i32
    return %arg0, %c0_i32 : i32, i32
  }
}

</mosaic_0001>

<bundles_post_ra>
// kernel: state_dependent_policy_forward.1
= control target key start
LH: loop header
LB: loop body
LE: loop exit
PB: predicated region body
PF: predicated region fallthrough
CT: control target
= control target key end

     0   :  { %v694_v1 = vmov 0   ;;  %vm65_vm0 = vcmask 261120   ;;  %v35_v51 = vlaneseq  ;;  %s906_s1 = inlined_call_operand.vmem [shape: bf16[32,256], index: 1, kind: input, shape index: {}]   ;;  %s907_s0 = inlined_call_operand.vmem [shape: f32[8,32], index: 0, kind: input, shape index: {}]   ;;  %s908_s3 = inlined_call_operand.vmem [shape: bf16[256,256], index: 3, kind: input, shape index: {}]   ;;  %s909_s5 = inlined_call_operand.vmem [shape: bf16[256,128], index: 5, kind: input, shape index: {}]   ;;  %s910_s2 = inlined_call_operand.vmem [shape: f32[1,256], index: 2, kind: input, shape index: {}]   ;;  %s911_s4 = inlined_call_operand.vmem [shape: f32[1,256], index: 4, kind: input, shape index: {}]   ;;  %s912_s6 = inlined_call_operand.vmem [shape: f32[1,128], index: 6, kind: input, shape index: {}]   ;;  %s913_s7 = inlined_call_operand.vmem [shape: bf16[8,128], index: 7, kind: output, shape index: {}]  }
   0x1   :  { %v622_v0 = vld [vmem:[%s906_s1 + $0x4] ss:$8 sps:$4 sm:$0xff]   ;;  %101 = vmatprep.mubr.bf16.mxu0 %v694_v1  ;;  %v624_v2 = vld [vmem:[%s906_s1] ss:$8 sps:$4 sm:$0xff]   ;;  %v625_v3 = vld [vmem:[%s906_s1 + $0x14] ss:$8 sps:$4 sm:$0xff]  }
   0x2   :  { %69 = vmatprep.subr.bf16.mxu0 %v622_v0  ;;  %v627_v4 = vld [vmem:[%s906_s1 + $0x10] ss:$8 sps:$4 sm:$0xff]   ;;  %v27_v5 = vld [vmem:[%s907_s0] sm:$0xff]  ;;  %v631_v8 = vld [vmem:[%s908_s3 + $0x14] ss:$8 sps:$4 sm:$0xff]   ;;  %v36_v52 = vshrl.u32 %v35_v51, 7 }
   0x3   :  { %70 = vmatpush1.bf16.msra.mxu0 %v624_v2  ;;  %v628_v6 = vld [vmem:[%s908_s3 + $0x4] ss:$8 sps:$4 sm:$0xff]   ;;  %v630_v7 = vld [vmem:[%s908_s3] ss:$8 sps:$4 sm:$0xff]   ;;  %v28_v9 = vpack.c.bf16 %v27_v5, %v27_v5  ;;  %v633_v10 = vld [vmem:[%s908_s3 + $0x10] ss:$8 sps:$4 sm:$0xff]  }
   0x4   :  { %71 = vmatprep.subr.bf16.mxu0 %v625_v3  ;;  %318 = vmatprep.subr.bf16.mxu1 %v628_v6  ;;  %v634_v11 = vld [vmem:[%s908_s3 + $0x24] ss:$8 sps:$4 sm:$0xff]   ;;  %v636_v12 = vld [vmem:[%s908_s3 + $0x20] ss:$8 sps:$4 sm:$0xff]   ;;  %v637_v13 = vld [vmem:[%s908_s3 + $0x34] ss:$8 sps:$4 sm:$0xff]  }
   0x5   :  { %319 = vmatpush1.bf16.msra.mxu1 %v630_v7  ;;  %v639_v14 = vld [vmem:[%s908_s3 + $0x30] ss:$8 sps:$4 sm:$0xff]   ;;  %v640_v15 = vld [vmem:[%s908_s3 + $0x44] ss:$8 sps:$4 sm:$0xff]   ;;  %v642_v16 = vld [vmem:[%s908_s3 + $0x40] ss:$8 sps:$4 sm:$0xff]  }
   0x6   :  { %320 = vmatprep.subr.bf16.mxu1 %v631_v8  ;;  %v643_v17 = vld [vmem:[%s908_s3 + $0x54] ss:$8 sps:$4 sm:$0xff]   ;;  %v645_v18 = vld [vmem:[%s908_s3 + $0x50] ss:$8 sps:$4 sm:$0xff]   ;;  %v646_v19 = vld [vmem:[%s908_s3 + $0x64] ss:$8 sps:$4 sm:$0xff]  }
   0x7   :  { %72 = vmatpush1.bf16.msra.mxu0 %v627_v4  ;;  %v648_v20 = vld [vmem:[%s908_s3 + $0x60] ss:$8 sps:$4 sm:$0xff]   ;;  %v649_v21 = vld [vmem:[%s908_s3 + $0x74] ss:$8 sps:$4 sm:$0xff]   ;;  %v651_v22 = vld [vmem:[%s908_s3 + $0x70] ss:$8 sps:$4 sm:$0xff]  }
   0x8   :  { %v652_v23 = vld [vmem:[%s908_s3 + $0x84] ss:$8 sps:$4 sm:$0xff]   ;;  %v654_v24 = vld [vmem:[%s908_s3 + $0x80] ss:$8 sps:$4 sm:$0xff]   ;;  %v655_v25 = vld [vmem:[%s908_s3 + $0x94] ss:$8 sps:$4 sm:$0xff]  }
   0x9   :  { %321 = vmatpush1.bf16.msra.mxu1 %v633_v10  ;;  %v657_v26 = vld [vmem:[%s908_s3 + $0x90] ss:$8 sps:$4 sm:$0xff]   ;;  %v658_v27 = vld [vmem:[%s908_s3 + $0xa4] ss:$8 sps:$4 sm:$0xff]   ;;  %v660_v28 = vld [vmem:[%s908_s3 + $0xa0] ss:$8 sps:$4 sm:$0xff]  }
   0xa   :  { %549 = vmatmul.mubr.msk.bf16.vlgmr.msra.gmra.mrb[0].mxu0 %vm65_vm0, %v28_v9  ;;  %322 = vmatprep.subr.bf16.mxu1 %v634_v11  ;;  %v661_v29 = vld [vmem:[%s908_s3 + $0xb4] ss:$8 sps:$4 sm:$0xff]   ;;  %v663_v30 = vld [vmem:[%s908_s3 + $0xb0] ss:$8 sps:$4 sm:$0xff]   ;;  %v664_v31 = vld [vmem:[%s908_s3 + $0xc4] ss:$8 sps:$4 sm:$0xff]  }
   0xb   :  { %v666_v32 = vld [vmem:[%s908_s3 + $0xc0] ss:$8 sps:$4 sm:$0xff]   ;;  %v667_v33 = vld [vmem:[%s908_s3 + $0xd4] ss:$8 sps:$4 sm:$0xff]   ;;  %v669_v34 = vld [vmem:[%s908_s3 + $0xd0] ss:$8 sps:$4 sm:$0xff]  }
   0xc   :  { %v670_v35 = vld [vmem:[%s908_s3 + $0xe4] ss:$8 sps:$4 sm:$0xff]   ;;  %v672_v36 = vld [vmem:[%s908_s3 + $0xe0] ss:$8 sps:$4 sm:$0xff]   ;;  %v673_v37 = vld [vmem:[%s908_s3 + $0xf4] ss:$8 sps:$4 sm:$0xff]  }
   0xd   :  { %323 = vmatpush1.bf16.msra.mxu1 %v636_v12  ;;  %v675_v38 = vld [vmem:[%s908_s3 + $0xf0] ss:$8 sps:$4 sm:$0xff]   ;;  %v676_v39 = vld [vmem:[%s909_s5 + $0x40] sm:$0xff]   ;;  %v678_v41 = vld [vmem:[%s909_s5 + $0x48] sm:$0xff]   ;;  %v37_v53 = vsub.s32 0, %v36_v52  ;;  %v41_v55 = vsub.s32 1, %v36_v52 }
   0xe   :  { %324 = vmatprep.subr.bf16.mxu1 %v637_v13  ;;  %v677_v40 = vld [vmem:[%s909_s5] sm:$0xff]   ;;  %599 = vmatprep.subr.bf16.mxu0 %v676_v39  ;;  %v679_v42 = vld [vmem:[%s909_s5 + $0x8] sm:$0xff]   ;;  %v680_v43 = vld [vmem:[%s909_s5 + $0x50] sm:$0xff]  }
   0xf   :  { %600 = vmatpush3.bf16.msra.mxu0 %v677_v40  ;;  %v681_v44 = vld [vmem:[%s909_s5 + $0x10] sm:$0xff]   ;;  %v682_v45 = vld [vmem:[%s909_s5 + $0x58] sm:$0xff]   ;;  %v684_v47 = vld [vmem:[%s909_s5 + $0x60] sm:$0xff]  }
  0x10   :  { %601 = vmatprep.subr.bf16.mxu0 %v678_v41  ;;  %v683_v46 = vld [vmem:[%s909_s5 + $0x18] sm:$0xff]   ;;  %v685_v48 = vld [vmem:[%s909_s5 + $0x20] sm:$0xff]   ;;  %v686_v49 = vld [vmem:[%s909_s5 + $0x68] sm:$0xff]  }
  0x11   :  { %325 = vmatpush1.bf16.msra.mxu1 %v639_v14  ;;  %v687_v50 = vld [vmem:[%s909_s5 + $0x28] sm:$0xff]   ;;  %v33_v54 = vld [vmem:[%s910_s2] sm:$0x3]  ;;  %v688_v4 = vld [vmem:[%s909_s5 + $0x70] sm:$0xff]  }
  0x12   :  { %326 = vmatprep.subr.bf16.mxu1 %v640_v15  ;;  %v38_v56 = vrot.slane %v33_v54, %v37_v53  ;;  %v42_v57 = vrot.slane %v33_v54, %v41_v55  ;;  %v689_v5 = vld [vmem:[%s909_s5 + $0x30] sm:$0xff]   ;;  %v690_v6 = vld [vmem:[%s909_s5 + $0x78] sm:$0xff]   ;;  %v146_v8 = vld [vmem:[%s911_s4] sm:$0x3] }
  0x13   :  { %602 = vmatpush3.bf16.msra.mxu0 %v679_v42  ;;  %v691_v7 = vld [vmem:[%s909_s5 + $0x38] sm:$0xff]   ;;  %v151_v9 = vrot.slane %v146_v8, %v37_v53  ;;  %v155_v10 = vrot.slane %v146_v8, %v41_v55 }
  0x14   :  { %603 = vmatprep.subr.bf16.mxu0 %v680_v43 }
  0x15   :  { %327 = vmatpush1.bf16.msra.mxu1 %v642_v16 }
  0x16   :  { %328 = vmatprep.subr.bf16.mxu1 %v643_v17 }
  0x17   :  { %604 = vmatpush3.bf16.msra.mxu0 %v681_v44 }
  0x18   :  { %605 = vmatprep.subr.bf16.mxu0 %v682_v45 }
  0x19   :  { %329 = vmatpush1.bf16.msra.mxu1 %v645_v18 }
  0x1a   :  { %330 = vmatprep.subr.bf16.mxu1 %v646_v19 }
  0x1b   :  { %606 = vmatpush3.bf16.msra.mxu0 %v683_v46 }
  0x1c   :  { %607 = vmatprep.subr.bf16.mxu0 %v684_v47 }
  0x1d   :  { %331 = vmatpush1.bf16.msra.mxu1 %v648_v20 }
  0x1e   :  { %332 = vmatprep.subr.bf16.mxu1 %v649_v21 }
  0x1f   :  { %608 = vmatpush3.bf16.msra.mxu0 %v685_v48 }
  0x20   :  { %609 = vmatprep.subr.bf16.mxu0 %v686_v49 }
  0x21   :  { %333 = vmatpush1.bf16.msra.mxu1 %v651_v22  ;;  %v582_v22 = vld [vmem:[%s912_s6] ss:$0 sm:$0xff] }
  0x22   :  { %334 = vmatprep.subr.bf16.mxu1 %v652_v23 }
  0x23   :  { %610 = vmatpush3.bf16.msra.mxu0 %v687_v50 }
  0x24   :  { %611 = vmatprep.subr.bf16.mxu0 %v688_v4 }
  0x25   :  { %335 = vmatpush1.bf16.msra.mxu1 %v654_v24 }
  0x26   :  { %336 = vmatprep.subr.bf16.mxu1 %v655_v25 }
  0x27   :  { %612 = vmatpush3.bf16.msra.mxu0 %v689_v5 }
  0x28   :  { %613 = vmatprep.subr.bf16.mxu0 %v690_v6 }
  0x29   :  { %337 = vmatpush1.bf16.msra.mxu1 %v657_v26 }
  0x2a   :  { %338 = vmatprep.subr.bf16.mxu1 %v658_v27 }
  0x2b   :  { %614 = vmatpush3.bf16.msra.mxu0 %v691_v7 }
  0x2d   :  { %339 = vmatpush1.bf16.msra.mxu1 %v660_v28 }
  0x2e   :  { %340 = vmatprep.subr.bf16.mxu1 %v661_v29 }
  0x31   :  { %341 = vmatpush1.bf16.msra.mxu1 %v663_v30 }
  0x32   :  { %342 = vmatprep.subr.bf16.mxu1 %v664_v31 }
  0x35   :  { %343 = vmatpush1.bf16.msra.mxu1 %v666_v32 }
  0x36   :  { %344 = vmatprep.subr.bf16.mxu1 %v667_v33 }
  0x39   :  { %345 = vmatpush1.bf16.msra.mxu1 %v669_v34 }
  0x3a   :  { %346 = vmatprep.subr.bf16.mxu1 %v670_v35 }
  0x3d   :  { %347 = vmatpush1.bf16.msra.mxu1 %v672_v36 }
  0x3e   :  { %348 = vmatprep.subr.bf16.mxu1 %v673_v37 }
  0x41   :  { %349 = vmatpush1.bf16.msra.mxu1 %v675_v38 }
  0xdd   :  { %v103_v58 = vpop.f32.mrb[0].mxu0 }
  0xde   :  { %v104_v59 = vadd.f32 %v103_v58, %v38_v56  ;;  %v105_v60 = vpop.f32.mrb[1].mxu0 }
  0xdf   :  { %v106_v61 = vadd.f32 %v105_v60, %v42_v57  ;;  %v107_v62 = vpop.f32.mrb[2].mxu0 }
  0xe0   :  { %v110_v63 = vmax.f32 %v104_v59, 0.0  ;;  %v108_v0 = vpop.f32.mrb[3].mxu0 }
  0xe1   :  { %v111_v1 = vmax.f32 %v106_v61, 0.0 }
  0xe2   :  { %v112_v3 = vpack.c.bf16 %v110_v63, %v110_v63 }
  0xe3   :  { %v113_v2 = vpack.c.bf16 %v111_v1, %v111_v1 }
  0xe5   :  { %350 = vmatprep.mubr.bf16.mxu1 %v113_v2 }
  0xe6   :  { %351 = vmatmul.mubr.bf16.vlgmr.msra.gmra.mrb[0].mxu1 %v112_v3 }
 0x1b9   :  { %v352_v11 = vpop.f32.mrb[0].mxu1 }
 0x1ba   :  { %v353_v12 = vadd.f32 %v352_v11, %v151_v9  ;;  %v354_v13 = vpop.f32.mrb[1].mxu1 }
 0x1bb   :  { %v355_v14 = vadd.f32 %v354_v13, %v155_v10  ;;  %v356_v15 = vpop.f32.mrb[2].mxu1 }
 0x1bc   :  { %v359_v16 = vmax.f32 %v353_v12, 0.0  ;;  %v357_v17 = vpop.f32.mrb[3].mxu1 }
 0x1bd   :  { %v360_v18 = vmax.f32 %v355_v14, 0.0 }
 0x1be   :  { %v361_v20 = vpack.c.bf16 %v359_v16, %v359_v16 }
 0x1bf   :  { %v362_v19 = vpack.c.bf16 %v360_v18, %v360_v18 }
 0x1c1   :  { %530 = vmatprep.mubr.bf16.mxu0 %v362_v19 }
 0x1c2   :  { %531 = vmatmul.mubr.bf16.vlgmr.msra.gmra.mrb[4].mxu0 %v361_v20 }
 0x295   :  { %v615_v21 = vpop.f32.mrb[4].mxu0 }
 0x296   :  { %v616_v23 = vpop.f32.mrb[5].mxu0 }
 0x297   :  { %v617_v24 = vadd.f32 %v616_v23, %v615_v21  ;;  %v618_v25 = vpop.f32.mrb[6].mxu0 }
 0x298   :  { %v619_v26 = vpop.f32.mrb[7].mxu0 }
 0x299   :  { %v533_v27 = vadd.f32 %v617_v24, %v582_v22 }
 0x29b   :  { %692 = vtanh.f32 %v533_v27 }
 0x2a5   :  { %v693_v28 = vpop.eup %692 }
 0x2a6   :  { %v539_v29 = vpack.c.bf16 %v693_v28, %v693_v28 }
 0x2a8   :  { %540 = vst [vmem:[%s913_s7] sm:$0xf] %v539_v29 }

</bundles_post_ra>
